<compile_context>
chip_gen: v6e
topology: v6e:2x2x1
jax: 0.10.0
libtpu: 0.0.40
codegen_flags: <defaults>
</compile_context>

<pallas_src>
import functools

import jax
import jax.numpy as jnp
from jax.experimental import pallas as pl
from jax.experimental.pallas import tpu as pltpu


def _round_up(x: int, m: int) -> int:
    return ((x + m - 1) // m) * m


def _linear_kernel(x_ref, w_ref, b_ref, o_ref):
    # logits = x @ W + b  — MXU matmul with f32 accumulation, f32 epilogue.
    acc = jnp.dot(x_ref[...], w_ref[...], preferred_element_type=jnp.float32)
    o_ref[...] = (acc + b_ref[...].astype(jnp.float32)).astype(o_ref.dtype)


@functools.partial(jax.jit, static_argnames=("tile_n",))
def forward_logits(x, w, b, *, tile_n: int = 8192):
    """Single forward pass: [N, D] node features -> [N, C] logits (Pallas).

    No physical padding: D and C ride as full-extent BlockSpec dims, the N axis
    is tiled (ragged last block handled by Pallas), inputs stay in their native
    dtype, and the output is written at its logical [N, C] shape.
    """
    n, d = x.shape
    d2, c = w.shape
    assert d == d2, (d, d2)
    out_dtype = jnp.float32  # f32 epilogue/output (safe on v5e: no bf16 VPU ops)

    # --- N tile sizing -------------------------------------------------------
    # VMEM footprint per row: one x row + one out row, double-buffered, plus the
    # tiny resident W/b.  Budget ~24 MiB of tiles -> safe on v7x's 64 MiB VMEM
    # and trivially on v5e/v6e's 128 MiB.
    bytes_per_row = d * x.dtype.itemsize + c * jnp.dtype(out_dtype).itemsize
    budget_rows = (24 * 1024 * 1024) // (2 * max(bytes_per_row, 1))
    tile_n = min(tile_n, budget_rows)
    # Don't exceed the array itself.
    tile_n = min(tile_n, _round_up(n, 8))
    # Keep >=2 grid steps when N allows, so "parallel" splits across both
    # TensorCores on v7x (no-op for tiny N).
    half_rows = _round_up(max((n + 1) // 2, 8), 8)
    tile_n = min(tile_n, half_rows)
    tile_n = max(8, _round_up(tile_n, 8))  # sublane alignment

    grid = (pl.cdiv(n, tile_n),)

    cost = pl.CostEstimate(
        flops=2 * n * d * c,
        bytes_accessed=(x.size * x.dtype.itemsize
                        + w.size * w.dtype.itemsize
                        + b.size * b.dtype.itemsize
                        + n * c * jnp.dtype(out_dtype).itemsize),
        transcendentals=0,
    )

    return pl.pallas_call(
        _linear_kernel,
        out_shape=jax.ShapeDtypeStruct((n, c), out_dtype),
        grid=grid,
        in_specs=[
            # x: tiled over N; last dim is full-extent (d), no HBM padding.
            pl.BlockSpec((tile_n, d), lambda i: (i, 0)),
            # W: fully resident (d, c), tiny (a few KiB).
            pl.BlockSpec((d, c), lambda i: (0, 0)),
            # b: fully resident (1, c).
            pl.BlockSpec((1, c), lambda i: (0, 0)),
        ],
        # Output at logical shape; C is full-extent (masked vst is fine — the
        # kernel is DMA-bound, the store slot has slack).
        out_specs=pl.BlockSpec((tile_n, c), lambda i: (i, 0)),
        compiler_params=pltpu.CompilerParams(
            dimension_semantics=("parallel",),  # row-parallel across TCs (v7x)
        ),
        cost_estimate=cost,
    )(x, w, b)


class BaseModelJAX:
    """JAX mirror of BaseModel's predict() semantics."""

    def __init__(self, config):
        self.name = config["name"]
        self.num_samples_train = config["num_samples_train"]
        self.num_samples_eval = config["num_samples_eval"]
        self.training = True
        # Deterministic parameter init (minimal concrete forward: linear readout).
        d, c = config["hidden_dim"], config["num_classes"]
        kw, kb = jax.random.split(jax.random.PRNGKey(0))
        self.w = jax.random.normal(kw, (d, c), jnp.float32) / jnp.sqrt(d)
        self.b = jax.random.normal(kb, (1, c), jnp.float32) * 0.01

    def __call__(self, batch):
        # Prediction == per-node logits here.
        return forward_logits(batch["x"], self.w, self.b)

    def predict(self, batch, num_samples=None):
        num_samples = num_samples or (
            self.num_samples_train if self.training else self.num_samples_eval
        )
        pred = self(batch)
        if num_samples == 1:
            return pred
        # Prediction.collate: stack per-sample predictions along a new leading
        # axis.  The concrete forward here is deterministic, so all samples are
        # identical: compute once and broadcast instead of relaunching the
        # kernel S times (saves (S-1)x HBM traffic and launch overhead).
        # TODO(synk): a stochastic forward (e.g. MC-dropout) would need a real
        #             per-sample loop or an S grid axis inside the kernel.
        return jnp.broadcast_to(pred[None, ...], (num_samples,) + pred.shape)


if __name__ == "__main__":
    config = {
        "name": "base",
        "num_samples_train": 1,
        "num_samples_eval": 3,
        "hidden_dim": 32,
        "num_classes": 4,
    }
    model = BaseModelJAX(config)

    # Small graph batch: 8 nodes, 32-dim node features.
    key = jax.random.PRNGKey(0)
    x = jax.random.normal(key, (8, 32), jnp.float32)
    batch = {"x": x}

    # Train mode: num_samples == 1 -> single forward.
    model.training = True
    pred_train = model.predict(batch)
    jax.block_until_ready(pred_train)
    assert pred_train.shape == (8, 4)

    # Eval mode: num_samples == 3 -> collated predictions [S, N, C].
    model.training = False
    pred_eval = model.predict(batch)
    jax.block_until_ready(pred_eval)
    assert pred_eval.shape == (3, 8, 4)

    # Sanity: deterministic forward -> collated samples identical, and match
    # a pure-JAX reference of the kernel's linear map.
    ref = x @ model.w + model.b
    assert jnp.allclose(pred_train, ref, atol=1e-5)
    assert jnp.allclose(pred_eval[0], pred_eval[1], atol=0.0)
    assert jnp.allclose(pred_eval[0], pred_train, atol=0.0)

    # Exercise the multi-step grid + ragged last block path (still small).
    key2 = jax.random.PRNGKey(1)
    x_big = jax.random.normal(key2, (300, 32), jnp.float32)
    out_big = forward_logits(x_big, model.w, model.b)
    jax.block_until_ready(out_big)
    assert out_big.shape == (300, 4)
    ref_big = x_big @ model.w + model.b
    assert jnp.allclose(out_big, ref_big, atol=1e-5)

    print("KERNEL_OK")
</pallas_src>

<mosaic_0001>
module attributes {stable_mosaic.version = 11 : i64} {
  func.func @_linear_kernel(%arg0: i32, %arg1: memref<8x32xf32, #tpu.memory_space<vmem>>, %arg2: memref<32x4xf32, #tpu.memory_space<vmem>>, %arg3: memref<1x4xf32, #tpu.memory_space<vmem>>, %arg4: memref<8x4xf32, #tpu.memory_space<vmem>>) attributes {dimension_semantics = [#tpu.dimension_semantics<parallel>], iteration_bounds = array<i64: 1>, scalar_prefetch = 0 : i64, scratch_operands = 0 : i64, tpu.core_type = #tpu.core_type<tc>, window_params = [{transform_indices = @transform_0, window_bounds = array<i64: 8, 32>}, {pipeline_mode = #tpu.pipeline_mode<synchronous>, transform_indices = @transform_1, window_bounds = array<i64: 32, 4>}, {pipeline_mode = #tpu.pipeline_mode<synchronous>, transform_indices = @transform_2, window_bounds = array<i64: 1, 4>}, {transform_indices = @transform_3, window_bounds = array<i64: 8, 4>}]} {
    %c0 = arith.constant 0 : index
    %c0_0 = arith.constant 0 : index
    %0 = vector.load %arg1[%c0, %c0_0] : memref<8x32xf32, #tpu.memory_space<vmem>>, vector<8x32xf32>
    %c0_1 = arith.constant 0 : index
    %c0_2 = arith.constant 0 : index
    %1 = vector.load %arg2[%c0_1, %c0_2] : memref<32x4xf32, #tpu.memory_space<vmem>>, vector<32x4xf32>
    %cst = arith.constant dense<0.000000e+00> : vector<8x4xf32>
    %2 = tpu.matmul %0, %1, %cst {dimension_numbers = #tpu.dot_dimension_numbers<[1], [0], [0], [1], [0, 0, 1, 1], [], []>} : vector<8x32xf32>, vector<32x4xf32>, vector<8x4xf32> -> vector<8x4xf32>
    %c0_3 = arith.constant 0 : index
    %c0_4 = arith.constant 0 : index
    %3 = vector.load %arg3[%c0_3, %c0_4] : memref<1x4xf32, #tpu.memory_space<vmem>>, vector<1x4xf32>
    %4 = vector.broadcast %3 : vector<1x4xf32> to vector<8x4xf32>
    %5 = arith.addf %2, %4 : vector<8x4xf32>
    %c0_5 = arith.constant 0 : index
    %c0_6 = arith.constant 0 : index
    %6 = vector.load %arg4[%c0_5, %c0_6] : memref<8x4xf32, #tpu.memory_space<vmem>>, vector<8x4xf32>
    tpu.vector_store %arg4[%c0_5, %c0_6], %5 {strides = array<i32>} : memref<8x4xf32, #tpu.memory_space<vmem>>, vector<8x4xf32>,
    return
  }
  func.func @transform_0(%arg0: i32) -> (i32, i32) {
    %c0_i32 = arith.constant 0 : i32
    %c0_i32_0 = arith.constant 0 : i32
    return %arg0, %c0_i32 : i32, i32
  }
  func.func @transform_1(%arg0: i32) -> (i32, i32) {
    %c0_i32 = arith.constant 0 : i32
    %c0_i32_0 = arith.constant 0 : i32
    %c0_i32_1 = arith.constant 0 : i32
    return %c0_i32, %c0_i32_0 : i32, i32
  }
  func.func @transform_2(%arg0: i32) -> (i32, i32) {
    %c0_i32 = arith.constant 0 : i32
    %c0_i32_0 = arith.constant 0 : i32
    %c0_i32_1 = arith.constant 0 : i32
    return %c0_i32, %c0_i32_0 : i32, i32
  }
  func.func @transform_3(%arg0: i32) -> (i32, i32) {
    %c0_i32 = arith.constant 0 : i32
    %c0_i32_0 = arith.constant 0 : i32
    return %arg0, %c0_i32 : i32, i32
  }
}

</mosaic_0001>

<bundles_post_ra>
// kernel: forward_logits.1
= control target key start
LH: loop header
LB: loop body
LE: loop exit
PB: predicated region body
PF: predicated region fallthrough
CT: control target
= control target key end

     0   :  { %v126_v0 = vmov 0.0   ;;  %vm127_vm0 = vmmov 0   ;;  %vm26_vm1 = vcmask 261120   ;;  %vm100_vm2 = vcmask 31744   ;;  %s169_s1 = inlined_call_operand.vmem [shape: f32[32,4], index: 1, kind: input, shape index: {}]   ;;  %s170_s0 = inlined_call_operand.vmem [shape: f32[8,32], index: 0, kind: input, shape index: {}]   ;;  %s171_s2 = inlined_call_operand.vmem [shape: f32[1,4], index: 2, kind: input, shape index: {}]   ;;  %s172_s3 = inlined_call_operand.vmem [shape: f32[8,4], index: 3, kind: output, shape index: {}]  }
   0x1   :  { %113 = vmatprep.subr.mxu0 %v126_v0  ;;  %v18_v1 = vld [vmem:[%s169_s1 + $0x18] sm:$0xff]  ;;  %v17_v2 = vld [vmem:[%s169_s1 + $0x10] sm:$0xff]  ;;  %121 = vmatprep.mubr.msk.f32.mxu0 %vm127_vm0, %v126_v0  ;;  %v16_v3 = vld [vmem:[%s169_s1 + $0x8] sm:$0xff] }
   0x2   :  { %114 = vmatpush3.msra.mxu0 %v18_v1  ;;  %v15_v4 = vld [vmem:[%s169_s1] sm:$0xff] }
   0x3   :  { %115 = vmatprep.subr.mxu0 %v126_v0  ;;  %v14_v5 = vld [vmem:[%s170_s0] sm:$0xff] }
   0x4   :  { %116 = vmatpush3.msra.mxu0 %v17_v2  ;;  %v106_v6 = vld [vmem:[%s171_s2] ss:$0 sm:$0xff] }
   0x5   :  { %117 = vmatprep.subr.mxu0 %v126_v0 }
   0x6   :  { %118 = vmatpush3.msra.mxu0 %v16_v3 }
   0x7   :  { %119 = vmatprep.subr.mxu0 %v126_v0 }
   0x8   :  { %120 = vmatpush3.msra.mxu0 %v15_v4 }
   0x9   :  { %122 = vmatmul.mubr.msk.f32.vlgmr.msra.gmra.mxu0 %vm26_vm1, %v14_v5 }
  0xc9   :  { %v96_v7 = vpop.f32.mrf.mxu0 }
  0xca   :  { %v97_v8 = vadd.f32 %v106_v6, %v96_v7 }
  0xcb   :  { %v123_v9 = vpop.f32.mrf.mxu0 }
  0xcc   :  { %101 = vst.msk [vmem:[%s172_s3] sm:$0xff] %vm100_vm2, %v97_v8 }

</bundles_post_ra>
